<compile_context>
chip_gen: v6e
topology: v6e:2x2x1
jax: 0.10.0
libtpu: 0.0.40
codegen_flags: <defaults>
</compile_context>

<pallas_src>
import functools

import jax
import jax.numpy as jnp
from jax.experimental import pallas as pl
from jax.experimental.pallas import tpu as pltpu


def _cdiv(a, b):
    return -(-a // b)


def _round_up(a, m):
    return _cdiv(a, m) * m


def _vmem_capacity_bytes():
    """Physical VMEM of the current generation; conservative fallback."""
    try:
        info = pltpu.get_tpu_info()
        cap = getattr(info, "vmem_capacity_bytes", None)
        if cap:
            return int(cap)
    except Exception:
        pass
    return 64 << 20  # v7x per-TC size: the smallest of the supported gens


def _pick_tiles(N, C, R, x_itemsize, out_itemsize):
    """Row-tile size (sublane rows of 128 pixels) + vmem_limit_bytes."""
    cap = _vmem_capacity_bytes()
    # Working-set budget for double-buffered blocks + compiler temporaries.
    # 128 MiB parts (v5e/v6e) -> 28 MiB; 64 MiB/TC (v7x) -> 24 MiB.
    work_budget = max(8 << 20, min(28 << 20, cap // 2 - (8 << 20)))

    io_per_row = 2 * 128 * (C * x_itemsize + 4 + out_itemsize)  # 2x: double buffer
    tmp_per_row = 128 * 4 * 10                                  # ~10 live f32 temps/pixel
    ts_cap = max(8, (work_budget // (io_per_row + tmp_per_row)) // 8 * 8)

    # Enough grid steps that the DMA/compute pipeline ramps up and v7x's two
    # TensorCores both get work, without collapsing to tiny tiles.
    min_steps_hw = max(2, _cdiv(8, N))
    steps_hw = max(_cdiv(R, ts_cap), min_steps_hw)
    ts = min(ts_cap, _round_up(_cdiv(R, steps_hw), 8))
    if ts >= R:
        ts = R  # full extent: always a legal sublane block

    vmem_est = ts * (io_per_row + tmp_per_row)
    vmem_limit = min(max(32 << 20, vmem_est + (16 << 20)),
                     max(cap - (4 << 20), 32 << 20))
    return ts, int(vmem_limit)


def _focal_loss_kernel(alpha_ref, x_ref, t_ref, o_ref, *, n_classes, gamma):
    # alpha_ref: SMEM (C,) float32  -- per-class alpha weights
    # x_ref:     (1, C, TS, 128)    -- logits block, pixels on the lane axis
    # t_ref:     (1, TS, 128) int32 -- target classes
    # o_ref:     (1, TS, 128)       -- per-pixel focal loss
    t = t_ref[0]                                        # (TS, 128)

    # Pass 1: per-pixel max over classes, unrolled VPU maximum in the logits'
    # NATIVE dtype (bf16 runs 2x wide on v6e/v7x); one cast at the end.
    m_native = x_ref[0, 0]
    for c in range(1, n_classes):
        m_native = jnp.maximum(m_native, x_ref[0, c])
    m = m_native.astype(jnp.float32)

    # Pass 2: softmax denominator + target-class logit / alpha "gather" by
    # VPU select.  No XLU cross-lane reduce, no MXU, and the full (C, ...)
    # log-softmax is never materialized.
    sumexp = jnp.zeros_like(m)
    z_t = jnp.zeros_like(m)
    at = jnp.zeros_like(m)
    for c in range(n_classes):
        z_c = x_ref[0, c].astype(jnp.float32) - m
        sumexp = sumexp + jnp.exp(z_c)
        match = t == c
        z_t = jnp.where(match, z_c, z_t)
        at = jnp.where(match, alpha_ref[c], at)

    logpt = z_t - jnp.log(sumexp)                       # log p_target
    pt = jnp.exp(logpt)                                 # p_target (pre-alpha, as in torch)
    logpt = logpt * at                                  # alpha weighting

    g = float(gamma)
    if g == 0.0:
        loss = -logpt
    else:
        one_m_pt = 1.0 - pt
        if g.is_integer() and 0.0 < g <= 16.0:
            # gamma = 2 (the common case) -> one cheap VPU multiply, no pow.
            mod = one_m_pt
            for _ in range(int(g) - 1):
                mod = mod * one_m_pt
        else:
            mod = one_m_pt ** g                         # non-integer gamma: EUP pow
        loss = -(mod * logpt)
    o_ref[0] = loss.astype(o_ref.dtype)


def focal_loss_pallas(logits_nchw, target_nhw, alpha=None, gamma=0.0,
                      *, out_dtype=jnp.float32):
    """Returns the unreduced per-element focal loss, shape (N*H*W,)."""
    N, C, H, W = logits_nchw.shape
    HW = H * W

    # ----- alpha handling (mirrors the PyTorch constructor), validated -----
    if alpha is None:
        alpha_vec = jnp.ones((C,), jnp.float32)          # no-op weighting
    elif isinstance(alpha, (float, int)):
        alpha_vec = jnp.array([alpha, 1.0 - alpha], jnp.float32)
    else:
        alpha_vec = jnp.asarray(alpha, jnp.float32).reshape(-1)
    if alpha_vec.shape[0] != C:
        raise ValueError(
            f"alpha has {alpha_vec.shape[0]} entries but logits have {C} classes")

    # ----- lane-dense layout: pixels on the 128-lane axis, no NCHW transpose -----
    x = logits_nchw.reshape(N, C, HW)                    # free view of contiguous NCHW
    t = target_nhw.reshape(N, HW)
    if t.dtype != jnp.int32:
        t = t.astype(jnp.int32)                          # no-op when already int32

    if HW % 128 != 0:
        # TODO(synk): handle the ragged H*W tail with an in-kernel manual DMA
        # (memory_space=pl.ANY + pl.ds) instead of this pad, which costs an
        # extra HBM pass over the logits.  The common H*W % 128 == 0 case
        # never takes this branch.
        pad = 128 - HW % 128
        x = jnp.pad(x, ((0, 0), (0, 0), (0, pad)))
        t = jnp.pad(t, ((0, 0), (0, pad)), constant_values=-1)
    HWp = x.shape[-1]
    R = HWp // 128
    x = x.reshape(N, C, R, 128)                          # contiguous split, no copy
    t = t.reshape(N, R, 128)

    # ----- tile sizing: big lane-dense blocks, generation-aware VMEM budget -----
    TS, vmem_limit = _pick_tiles(N, C, R,
                                 jnp.dtype(x.dtype).itemsize,
                                 jnp.dtype(out_dtype).itemsize)
    grid = (N, pl.cdiv(R, TS))                           # boundary block is masked

    kernel = functools.partial(_focal_loss_kernel, n_classes=C, gamma=float(gamma))

    out = pl.pallas_call(
        kernel,
        out_shape=jax.ShapeDtypeStruct((N, R, 128), out_dtype),
        grid_spec=pltpu.PrefetchScalarGridSpec(
            num_scalar_prefetch=0,
            grid=grid,
            in_specs=[
                # alpha: whole (C,) table resident in SMEM, scalar reads in-kernel.
                pl.BlockSpec(memory_space=pltpu.MemorySpace.SMEM),
                # logits: (1, C, TS, 128) class-major block.
                pl.BlockSpec((1, C, TS, 128), lambda n, j: (n, 0, j, 0)),
                # targets: (1, TS, 128) lane-dense block.
                pl.BlockSpec((1, TS, 128), lambda n, j: (n, j, 0)),
            ],
            # lane-dense output: last dim 128 -> unmasked full-width stores.
            out_specs=pl.BlockSpec((1, TS, 128), lambda n, j: (n, j, 0)),
        ),
        compiler_params=pltpu.CompilerParams(
            dimension_semantics=("parallel", "parallel"),
            vmem_limit_bytes=vmem_limit,
        ),
    )(alpha_vec, x, t)

    out = out.reshape(N, HWp)
    if HWp != HW:
        out = out[:, :HW]
    return out.reshape(N * HW)


def focal_loss_reference(logits_nchw, target_nhw, alpha_vec, gamma):
    N, C, H, W = logits_nchw.shape
    M = N * H * W
    x = jnp.transpose(logits_nchw, (0, 2, 3, 1)).reshape(M, C).astype(jnp.float32)
    t = target_nhw.reshape(M).astype(jnp.int32)
    logsm = jax.nn.log_softmax(x, axis=-1)
    logpt = jnp.take_along_axis(logsm, t[:, None], axis=1)[:, 0]
    pt = jnp.exp(logpt)
    at = jnp.asarray(alpha_vec, jnp.float32)[t]
    logpt = logpt * at
    return -1.0 * (1.0 - pt) ** gamma * logpt


if __name__ == "__main__":
    key = jax.random.PRNGKey(0)
    N, C, H, W = 2, 4, 16, 16          # M = 512 pixels
    gamma = 2.0
    # alpha given as per-class weights (the `isinstance(alpha, list)` path)
    alpha = [0.25, 0.25, 0.25, 0.25]

    k1, k2 = jax.random.split(key)
    logits = jax.random.normal(k1, (N, C, H, W), dtype=jnp.float32)
    target = jax.random.randint(k2, (N, H, W), 0, C, dtype=jnp.int32)

    loss = focal_loss_pallas(logits, target, alpha, gamma)
    loss = jax.block_until_ready(loss)

    ref = focal_loss_reference(logits, target, jnp.asarray(alpha, jnp.float32), gamma)
    assert loss.shape == (N * H * W,)
    assert jnp.allclose(loss, ref, atol=1e-5, rtol=1e-5), "mismatch vs reference"

    # alpha=None / gamma=0 path (plain per-pixel NLL): at == 1, modulator == 1.
    loss0 = jax.block_until_ready(focal_loss_pallas(logits, target, None, 0.0))
    ref0 = focal_loss_reference(logits, target, jnp.ones((C,), jnp.float32), 0.0)
    assert jnp.allclose(loss0, ref0, atol=1e-5, rtol=1e-5), "mismatch (gamma=0)"

    print("KERNEL_OK")
</pallas_src>

<mosaic_0001>
module attributes {stable_mosaic.version = 11 : i64} {
  func.func @_focal_loss_kernel(%arg0: i32, %arg1: i32, %arg2: memref<4xf32, #tpu.memory_space<smem>>, %arg3: memref<1x4x2x128xf32, #tpu.memory_space<vmem>>, %arg4: memref<1x2x128xi32, #tpu.memory_space<vmem>>, %arg5: memref<1x2x128xf32, #tpu.memory_space<vmem>>) attributes {dimension_semantics = [#tpu.dimension_semantics<parallel>, #tpu.dimension_semantics<parallel>], iteration_bounds = array<i64: 2, 1>, scalar_prefetch = 0 : i64, scratch_operands = 0 : i64, tpu.core_type = #tpu.core_type<tc>, window_params = [{transform_indices = @transform_0, window_bounds = array<i64: 4>}, {transform_indices = @transform_1, window_bounds = array<i64: 1, 4, 2, 128>}, {transform_indices = @transform_2, window_bounds = array<i64: 1, 2, 128>}, {transform_indices = @transform_3, window_bounds = array<i64: 1, 2, 128>}]} {
    %c0 = arith.constant 0 : index
    %c0_0 = arith.constant 0 : index
    %c0_1 = arith.constant 0 : index
    %0 = vector.load %arg4[%c0, %c0_0, %c0_1] : memref<1x2x128xi32, #tpu.memory_space<vmem>>, vector<1x2x128xi32>
    %1 = vector.shape_cast %0 : vector<1x2x128xi32> to vector<2x128xi32>
    %c0_2 = arith.constant 0 : index
    %c0_3 = arith.constant 0 : index
    %c0_4 = arith.constant 0 : index
    %c0_5 = arith.constant 0 : index
    %2 = vector.load %arg3[%c0_2, %c0_3, %c0_4, %c0_5] : memref<1x4x2x128xf32, #tpu.memory_space<vmem>>, vector<1x1x2x128xf32>
    %3 = vector.shape_cast %2 : vector<1x1x2x128xf32> to vector<2x128xf32>
    %c0_6 = arith.constant 0 : index
    %c1 = arith.constant 1 : index
    %c0_7 = arith.constant 0 : index
    %c0_8 = arith.constant 0 : index
    %4 = vector.load %arg3[%c0_6, %c1, %c0_7, %c0_8] : memref<1x4x2x128xf32, #tpu.memory_space<vmem>>, vector<1x1x2x128xf32>
    %5 = vector.shape_cast %4 : vector<1x1x2x128xf32> to vector<2x128xf32>
    %6 = arith.maximumf %3, %5 : vector<2x128xf32>
    %c0_9 = arith.constant 0 : index
    %c2 = arith.constant 2 : index
    %c0_10 = arith.constant 0 : index
    %c0_11 = arith.constant 0 : index
    %7 = vector.load %arg3[%c0_9, %c2, %c0_10, %c0_11] : memref<1x4x2x128xf32, #tpu.memory_space<vmem>>, vector<1x1x2x128xf32>
    %8 = vector.shape_cast %7 : vector<1x1x2x128xf32> to vector<2x128xf32>
    %9 = arith.maximumf %6, %8 : vector<2x128xf32>
    %c0_12 = arith.constant 0 : index
    %c3 = arith.constant 3 : index
    %c0_13 = arith.constant 0 : index
    %c0_14 = arith.constant 0 : index
    %10 = vector.load %arg3[%c0_12, %c3, %c0_13, %c0_14] : memref<1x4x2x128xf32, #tpu.memory_space<vmem>>, vector<1x1x2x128xf32>
    %11 = vector.shape_cast %10 : vector<1x1x2x128xf32> to vector<2x128xf32>
    %12 = arith.maximumf %9, %11 : vector<2x128xf32>
    %cst = arith.constant 0.000000e+00 : f32
    %13 = vector.broadcast %cst : f32 to vector<2x128xf32>
    %cst_15 = arith.constant 0.000000e+00 : f32
    %14 = vector.broadcast %cst_15 : f32 to vector<2x128xf32>
    %cst_16 = arith.constant 0.000000e+00 : f32
    %15 = vector.broadcast %cst_16 : f32 to vector<2x128xf32>
    %c0_17 = arith.constant 0 : index
    %c0_18 = arith.constant 0 : index
    %c0_19 = arith.constant 0 : index
    %c0_20 = arith.constant 0 : index
    %16 = vector.load %arg3[%c0_17, %c0_18, %c0_19, %c0_20] : memref<1x4x2x128xf32, #tpu.memory_space<vmem>>, vector<1x1x2x128xf32>
    %17 = vector.shape_cast %16 : vector<1x1x2x128xf32> to vector<2x128xf32>
    %18 = arith.subf %17, %12 : vector<2x128xf32>
    %19 = math.exp %18 : vector<2x128xf32>
    %20 = arith.addf %13, %19 : vector<2x128xf32>
    %c0_i32 = arith.constant 0 : i32
    %21 = vector.broadcast %c0_i32 : i32 to vector<2x128xi32>
    %22 = arith.cmpi eq, %1, %21 : vector<2x128xi32>
    %23 = arith.select %22, %18, %14 : vector<2x128xi1>, vector<2x128xf32>
    %c0_21 = arith.constant 0 : index
    %24 = memref.load %arg2[%c0_21] : memref<4xf32, #tpu.memory_space<smem>>
    %25 = vector.broadcast %24 : f32 to vector<2x128xf32>
    %26 = arith.select %22, %25, %15 : vector<2x128xi1>, vector<2x128xf32>
    %c0_22 = arith.constant 0 : index
    %c1_23 = arith.constant 1 : index
    %c0_24 = arith.constant 0 : index
    %c0_25 = arith.constant 0 : index
    %27 = vector.load %arg3[%c0_22, %c1_23, %c0_24, %c0_25] : memref<1x4x2x128xf32, #tpu.memory_space<vmem>>, vector<1x1x2x128xf32>
    %28 = vector.shape_cast %27 : vector<1x1x2x128xf32> to vector<2x128xf32>
    %29 = arith.subf %28, %12 : vector<2x128xf32>
    %30 = math.exp %29 : vector<2x128xf32>
    %31 = arith.addf %20, %30 : vector<2x128xf32>
    %c1_i32 = arith.constant 1 : i32
    %32 = vector.broadcast %c1_i32 : i32 to vector<2x128xi32>
    %33 = arith.cmpi eq, %1, %32 : vector<2x128xi32>
    %34 = arith.select %33, %29, %23 : vector<2x128xi1>, vector<2x128xf32>
    %c1_26 = arith.constant 1 : index
    %35 = memref.load %arg2[%c1_26] : memref<4xf32, #tpu.memory_space<smem>>
    %36 = vector.broadcast %35 : f32 to vector<2x128xf32>
    %37 = arith.select %33, %36, %26 : vector<2x128xi1>, vector<2x128xf32>
    %c0_27 = arith.constant 0 : index
    %c2_28 = arith.constant 2 : index
    %c0_29 = arith.constant 0 : index
    %c0_30 = arith.constant 0 : index
    %38 = vector.load %arg3[%c0_27, %c2_28, %c0_29, %c0_30] : memref<1x4x2x128xf32, #tpu.memory_space<vmem>>, vector<1x1x2x128xf32>
    %39 = vector.shape_cast %38 : vector<1x1x2x128xf32> to vector<2x128xf32>
    %40 = arith.subf %39, %12 : vector<2x128xf32>
    %41 = math.exp %40 : vector<2x128xf32>
    %42 = arith.addf %31, %41 : vector<2x128xf32>
    %c2_i32 = arith.constant 2 : i32
    %43 = vector.broadcast %c2_i32 : i32 to vector<2x128xi32>
    %44 = arith.cmpi eq, %1, %43 : vector<2x128xi32>
    %45 = arith.select %44, %40, %34 : vector<2x128xi1>, vector<2x128xf32>
    %c2_31 = arith.constant 2 : index
    %46 = memref.load %arg2[%c2_31] : memref<4xf32, #tpu.memory_space<smem>>
    %47 = vector.broadcast %46 : f32 to vector<2x128xf32>
    %48 = arith.select %44, %47, %37 : vector<2x128xi1>, vector<2x128xf32>
    %c0_32 = arith.constant 0 : index
    %c3_33 = arith.constant 3 : index
    %c0_34 = arith.constant 0 : index
    %c0_35 = arith.constant 0 : index
    %49 = vector.load %arg3[%c0_32, %c3_33, %c0_34, %c0_35] : memref<1x4x2x128xf32, #tpu.memory_space<vmem>>, vector<1x1x2x128xf32>
    %50 = vector.shape_cast %49 : vector<1x1x2x128xf32> to vector<2x128xf32>
    %51 = arith.subf %50, %12 : vector<2x128xf32>
    %52 = math.exp %51 : vector<2x128xf32>
    %53 = arith.addf %42, %52 : vector<2x128xf32>
    %c3_i32 = arith.constant 3 : i32
    %54 = vector.broadcast %c3_i32 : i32 to vector<2x128xi32>
    %55 = arith.cmpi eq, %1, %54 : vector<2x128xi32>
    %56 = arith.select %55, %51, %45 : vector<2x128xi1>, vector<2x128xf32>
    %c3_36 = arith.constant 3 : index
    %57 = memref.load %arg2[%c3_36] : memref<4xf32, #tpu.memory_space<smem>>
    %58 = vector.broadcast %57 : f32 to vector<2x128xf32>
    %59 = arith.select %55, %58, %48 : vector<2x128xi1>, vector<2x128xf32>
    %60 = math.log %53 : vector<2x128xf32>
    %61 = arith.subf %56, %60 : vector<2x128xf32>
    %62 = math.exp %61 : vector<2x128xf32>
    %63 = arith.mulf %61, %59 : vector<2x128xf32>
    %cst_37 = arith.constant 1.000000e+00 : f32
    %64 = vector.broadcast %cst_37 : f32 to vector<2x128xf32>
    %65 = arith.subf %64, %62 : vector<2x128xf32>
    %66 = arith.mulf %65, %65 : vector<2x128xf32>
    %67 = arith.mulf %66, %63 : vector<2x128xf32>
    %cst_38 = arith.constant 0.000000e+00 : f32
    %68 = vector.broadcast %cst_38 : f32 to vector<2x128xf32>
    %69 = arith.subf %68, %67 : vector<2x128xf32>
    %c0_39 = arith.constant 0 : index
    %c0_40 = arith.constant 0 : index
    %c0_41 = arith.constant 0 : index
    %70 = vector.load %arg5[%c0_39, %c0_40, %c0_41] : memref<1x2x128xf32, #tpu.memory_space<vmem>>, vector<1x2x128xf32>
    %71 = vector.shape_cast %70 : vector<1x2x128xf32> to vector<2x128xf32>
    %72 = vector.shape_cast %69 : vector<2x128xf32> to vector<1x2x128xf32>
    tpu.vector_store %arg5[%c0_39, %c0_40, %c0_41], %72 {strides = array<i32>} : memref<1x2x128xf32, #tpu.memory_space<vmem>>, vector<1x2x128xf32>,
    return
  }
  func.func @transform_0(%arg0: i32, %arg1: i32) -> i32 {
    %c0_i32 = arith.constant 0 : i32
    %c0_i32_0 = arith.constant 0 : i32
    return %c0_i32 : i32
  }
  func.func @transform_1(%arg0: i32, %arg1: i32) -> (i32, i32, i32, i32) {
    %c0_i32 = arith.constant 0 : i32
    %c0_i32_0 = arith.constant 0 : i32
    %c0_i32_1 = arith.constant 0 : i32
    return %arg0, %c0_i32, %arg1, %c0_i32_0 : i32, i32, i32, i32
  }
  func.func @transform_2(%arg0: i32, %arg1: i32) -> (i32, i32, i32) {
    %c0_i32 = arith.constant 0 : i32
    %c0_i32_0 = arith.constant 0 : i32
    return %arg0, %arg1, %c0_i32 : i32, i32, i32
  }
  func.func @transform_3(%arg0: i32, %arg1: i32) -> (i32, i32, i32) {
    %c0_i32 = arith.constant 0 : i32
    %c0_i32_0 = arith.constant 0 : i32
    return %arg0, %arg1, %c0_i32 : i32, i32, i32
  }
}

</mosaic_0001>

<bundles_post_ra>
// kernel: tpu_custom_call.1
= control target key start
LH: loop header
LB: loop body
LE: loop exit
PB: predicated region body
PF: predicated region fallthrough
CT: control target
= control target key end

     0   :  { %s934_s0 = inlined_call_operand.hbm [shape: f32[4], index: 0, kind: input, shape index: {}]   ;;  %s935_s1 = inlined_call_operand.hbm [shape: f32[2,4,2,128], index: 1, kind: input, shape index: {}]   ;;  %s936_s2 = inlined_call_operand.hbm [shape: s32[2,2,128], index: 2, kind: input, shape index: {}]   ;;  %s937_s3 = inlined_call_operand.hbm [shape: f32[2,2,128], index: 3, kind: output, shape index: {}]  }
   0x1   :  { %941 = sst [smem:[#allocation16_spill]] %s934_s0 }
   0x2   :  { %942 = sst [smem:[#allocation17_spill]] %s935_s1 }
   0x3   :  { %8 = vsyncpa [#allocation5], 0 }
   0x4   :  { %9 = vsyncpa [#allocation3], 0 }
   0x5   :  { %11 = vsyncpa [#allocation3 + $0x1], 0 }
   0x6   :  { %12 = vsyncpa [#allocation8], 0 }
   0x7   :  { %14 = vsyncpa [#allocation8 + $0x1], 0 }
   0x8   :  { %15 = vsyncpa [#allocation4], 0 }
   0x9   :  { %17 = vsyncpa [#allocation4 + $0x1], 0  ;;  %s749_s12 = smov 0   ;;  %s751_s13 = smov 0  }
   0xa   :  { %s753_s14 = smov 0   ;;  %s755_s15 = smov 0  }
   0xb   :  { %s757_s16 = smov 0   ;;  %s759_s17 = smov 0  }
   0xc LB: > { %943 = sst [smem:[#allocation14_spill]] %s721_s17  ;;  %s448_s18 = sadd.s32 4294967295, %s721_s17   ;;  %s721_s17 = sphi %s759_s17, %s23_s17   ;;  %s717_s16 = sphi %s757_s16, %s961_s16   ;;  %s713_s15 = sphi %s755_s15, %s960_s15   ;;  %s709_s14 = sphi %s753_s14, %s959_s14   ;;  %s705_s13 = sphi %s751_s13, %s958_s13   ;;  %s701_s12 = sphi %s749_s12, %s957_s12  }
   0xd   : > { %s449_s19 = sadd.s32 4294967294, %s721_s17   ;;  %s65_s20 = sadd.s32 1, %s709_s14 }
   0xe   : > { %p72_p0 = scmp.ne.s32.totalorder %s709_s14, %s705_s13  ;;  %p73_p1 = scmp.eq.s32.totalorder %s721_s17, 0 }
   0xf   : > { %p78_p2 = scmp.ne.s32.totalorder %s705_s13, %s701_s12  ;;  %p787_p3 = scmp.eq.s32.totalorder %s448_s18, 0 }
  0x10   : > { %p132_p4 = scmp.eq.s32.totalorder %s448_s18, 1  ;;  %p74_p5 = por %p73_p1, %p72_p0 }
  0x11   : > { %p138_p6 = scmp.eq.s32.totalorder %s449_s19, 1  ;;  %p793_p7 = por %p787_p3, %p78_p2 }
  0x12   : > { %p797_p8 = por %p132_p4, %p72_p0  ;;  %p450_p10 = scmp.ge.s32.totalorder %s721_s17, 1 }
  0x13   : > { %p801_p9 = por %p138_p6, %p78_p2  ;;  %p145_p11 = scmp.lt.s32.totalorder %s721_s17, 3 }
  0x14   : > { %p500_p1 = scmp.lt.s32.totalorder %s721_s17, 2  ;;  %s814_s26 = sand.u32 1, %s709_s14  }
  0x15   : > { %s947_s24 = scalar_select %p801_p9, 1, 0 }
  0x16   : > { %p808_p13 = pnand %p450_p10, %p145_p11  ;;  %p818_p2 = pnand %p500_p1, %p74_p5 }
  0x17   : > { %s35_s28 = sadd.s32 1, %s717_s16  ;;  %s453_s29 = sshll.u32 %s814_s26, 3 }
  0x18   : > { %p484_p0 = pneg %p808_p13  ;;  %p37_p6 = scmp.ge.s32.totalorder %s35_s28, 2 }
  0x19   : > { %s723_s30 = smov [#allocation2]   ;;  %s950_s0 = sld [smem:[#allocation16_spill]] }
  0x1a   : > { %p485_p4 = pnand %p484_p0, %p787_p3  ;;  %s963_s28 = smov (%p37_p6, %s35_s28), 0 }
  0x1b   : > { %951 = sst [smem:[#allocation15_spill]] %s963_s28  ;;  %s473_s6 = sshll.u32 %s717_s16, 7 }
  0x1c   : > { %s60_s7 = ssub.s32 %s717_s16, %s963_s28  ;;  %s952_s1 = sld [smem:[#allocation17_spill]] }
  0x1d   : > { %p63_p5 = scmp.eq.s32.totalorder %s60_s7, 0  ;;  %s171_s11 = scalar_lea.vmem [#allocation6], %s453_s29 }
  0x1e   : > { %s179_s18 = sshll.u32 %s171_s11, 4  ;;  %s168_s17 = scalar_lea.sflag [#allocation3], %s814_s26  ;;  %s180_s18 = int_to_ptr.vmem [resolvable:$true] %s179_s18 }
  0x1f   : > { %487 = dma.hbm_to_smem (!%p485_p4), %s950_s0, 16, %s723_s30, [#allocation5]  }
  0x20   : > { %s840_s19 = scalar_select %p63_p5, %s709_s14, %s65_s20  }
  0x21   : > { %p579_p10 = pneg %p818_p2  ;;  %s590_s30 = scalar_lea.vmem %s180_s18, 128 }
  0x22   : > { %s178_s10 = scalar_lea.hbm %s952_s1, %s473_s6  ;;  %p591_p11 = scmp.ne.s32.totalorder %s180_s18, %s590_s30 }
  0x23   : > { %s724_s4 = smov [#allocation6]  }
  0x24   : > { %p593_p1 = pnand %p591_p11, %p579_p10  ;;  %s595_s5 = sshll.u32 %s724_s4, 4  ;;  %s596_s5 = int_to_ptr.vmem [resolvable:$false] %s595_s5 }
  0x25   : > { %s597_s6 = scalar_lea.vmem %s596_s5, 256  ;;  %p598_p4 = scmp.lt.s32.totalorder %s180_s18, %s596_s5 }
  0x26   : > { %p594_p0 = pneg %p593_p1  ;;  %p599_p6 = scmp.lt.s32.totalorder %s597_s6, %s590_s30 }
  0x28   : > { %p600_p12 = por %p599_p6, %p598_p4 }
  0x2a   : > { %p601_p9 = pnand %p600_p12, %p594_p0 }
  0x2c   : > { %604 = shalt.err (!%p601_p9)
}
  0x2d   : > { %s725_s20 = smov 32   ;;  %s726_s29 = smov 2  }
  0x2e   : > { %491 = dma.hbm_to_vmem [thread:$0]  (!%p818_p2), %s178_s10, 128, %s180_s18, %s168_s17, %s725_s20, %s725_s20, %s726_s29  }
  0x2f   : > { %s456_s7 = sshll.u32 %s814_s26, 1  ;;  %s457_s8 = sshll.u32 %s717_s16, 5 }
  0x30   : > { %s199_s4 = scalar_lea.hbm %s936_s2, %s457_s8  ;;  %s193_s5 = scalar_lea.vmem [#allocation7], %s456_s7 }
  0x31   : > { %s201_s30 = sshll.u32 %s193_s5, 4  ;;  %s190_s6 = scalar_lea.sflag [#allocation8], %s814_s26  ;;  %s202_s30 = int_to_ptr.vmem [resolvable:$true] %s201_s30 }
  0x32   : > { %s618_s0 = scalar_lea.vmem %s202_s30, 32  ;;  %s727_s1 = smov [#allocation7]  }
  0x33   : > { %p619_p9 = scmp.ne.s32.totalorder %s202_s30, %s618_s0  ;;  %s623_s28 = sshll.u32 %s727_s1, 4  ;;  %s624_s28 = int_to_ptr.vmem [resolvable:$false] %s623_s28 }
  0x34   : > { %s625_s17 = scalar_lea.vmem %s624_s28, 64  ;;  %p626_p11 = scmp.lt.s32.totalorder %s202_s30, %s624_s28 }
  0x35   : > { %p621_p12 = pnand %p619_p9, %p579_p10  ;;  %p627_p1 = scmp.lt.s32.totalorder %s625_s17, %s618_s0 }
  0x37   : > { %p622_p5 = pneg %p621_p12  ;;  %p628_p0 = por %p627_p1, %p626_p11 }
  0x39   : > { %p629_p4 = pnand %p628_p0, %p622_p5 }
  0x3b   : > { %632 = shalt.err (!%p629_p4)
}
  0x3c   : > { %494 = dma.hbm_to_vmem [thread:$0]  (!%p818_p2), %s199_s4, 32, %s202_s30, %s190_s6  }
  0x3d   : > { %210 = sbr.rel (%p808_p13) target bundleno = 163 (0xa3), region = 32 }
  0x42   : > { %684 = dma.done.wait (%p787_p3), [#allocation5], 16  }
  0x43   : > { %686 = vsyncadd (%p787_p3), [#allocation5], 4294967280  ;;  %s868_s1 = sand.u32 1, %s705_s13  }
  0x44   : > { %s460_s0 = sshll.u32 %s868_s1, 3  ;;  %s217_s26 = scalar_lea.sflag [#allocation3], %s868_s1 }
  0x45   : > { %s220_s28 = scalar_lea.vmem [#allocation6], %s460_s0 }
  0x46   : > { %688 = dma.done.wait (%p793_p7), %s217_s26, 128  }
  0x47   : > { %690 = vsyncadd (%p793_p7), %s217_s26, 4294967168  ;;  %s461_s21 = sshll.u32 %s868_s1, 1  ;;  %s226_s25 = scalar_lea.sflag [#allocation8], %s868_s1 }
  0x48   : > { %s229_s27 = scalar_lea.vmem [#allocation7], %s461_s21 }
  0x49   : > { %692 = dma.done.wait (%p793_p7), %s226_s25, 32  }
  0x4a   : > { %694 = vsyncadd (%p793_p7), %s226_s25, 4294967264 }
  0x4b   : > { %234 = sfence }
  0x4c   : > { %v259_v0 = vld [vmem:[%s220_s28] sm:$0x3]  ;;  %v463_v1 = vld [vmem:[%s220_s28 + $0x2] sm:$0x3]  ;;  %v464_v2 = vld [vmem:[%s220_s28 + $0x4] sm:$0x3] }
  0x4d   : > { %v262_v3 = vmax.f32 %v259_v0, %v463_v1  ;;  %v465_v4 = vld [vmem:[%s220_s28 + $0x6] sm:$0x3]  ;;  %v258_v21 = vld [vmem:[%s229_s27] sm:$0x3]  ;;  %s275_s22 = sld [smem:[#allocation2]]  ;;  %s257_s29 = scalar_lea.vmem [#allocation9], %s461_s21 }
  0x4e   : > { %vm273_vm0 = vcmp.eq.s32.totalorder %v258_v21, 0  ;;  %vm282_vm1 = vcmp.eq.s32.totalorder %v258_v21, 1  ;;  %vm291_vm2 = vcmp.eq.s32.totalorder %v258_v21, 2  ;;  %vm300_vm3 = vcmp.eq.s32.totalorder %v258_v21, 3  ;;  %s466_s10 = sld [smem:[#allocation2 + $0x1]]  ;;  %s331_s7 = sshll.u32 %s257_s29, 4  ;;  %s332_s7 = int_to_ptr.vmem [resolvable:$true] %s331_s7 }
  0x4f   : > { %v265_v5 = vmax.f32 %v262_v3, %v464_v2  ;;  %s467_s18 = sld [smem:[#allocation2 + $0x2]]  ;;  %s470_s8 = sshll.u32 %s713_s15, 5 }
  0x50   : > { %s468_s20 = sld [smem:[#allocation2 + $0x3]]  ;;  %s329_s4 = scalar_lea.hbm %s937_s3, %s470_s8 }
  0x51   : > { %v268_v6 = vmax.f32 %v265_v5, %v465_v4  ;;  %s317_s5 = scalar_lea.sflag [#allocation4], %s868_s1  ;;  %s633_s30 = scalar_lea.vmem %s332_s7, 32 }
  0x52   : > { %p634_p3 = scmp.ne.s32.totalorder %s332_s7, %s633_s30  ;;  %s728_s6 = smov [#allocation9]  }
  0x53   : > { %v269_v7 = vsub.f32 %v259_v0, %v268_v6  ;;  %v278_v8 = vsub.f32 %v463_v1, %v268_v6  ;;  %v287_v9 = vsub.f32 %v464_v2, %v268_v6  ;;  %v296_v10 = vsub.f32 %v465_v4, %v268_v6  ;;  %s637_s17 = sshll.u32 %s728_s6, 4  ;;  %s638_s17 = int_to_ptr.vmem [resolvable:$false] %s637_s17 }
  0x54   : > { %v276_v31 = vstv %s275_s22  ;;  %v285_v33 = vstv %s466_s10  ;;  %p635_p7 = pnand %p634_p3, %p797_p8  ;;  %s639_s0 = scalar_lea.vmem %s638_s17, 64 }
  0x55   : > { %v270_v11 = vmul.f32 1.442695, %v269_v7  ;;  %v279_v12 = vmul.f32 1.442695, %v278_v8  ;;  %v288_v13 = vmul.f32 1.442695, %v287_v9  ;;  %v294_v35 = vstv %s467_s18  ;;  %p640_p2 = scmp.lt.s32.totalorder %s332_s7, %s638_s17  ;;  %p641_p10 = scmp.lt.s32.totalorder %s639_s0, %s633_s30 }
  0x56   : > { %v297_v14 = vmul.f32 1.442695, %v296_v10  ;;  %v274_v23 = vsel %vm273_vm0, %v269_v7, 0.0  ;;  %v277_v32 = vsel %vm273_vm0, %v276_v31, 0.0  ;;  %v303_v37 = vstv %s468_s20  ;;  %p636_p13 = pneg %p635_p7 }
  0x57   : > { %554 = vpow2.f32 %v270_v11  ;;  %v283_v24 = vsel %vm282_vm1, %v278_v8, %v274_v23  ;;  %v286_v34 = vsel %vm282_vm1, %v285_v33, %v277_v32  ;;  %p642_p6 = por %p641_p10, %p640_p2 }
  0x58   : > { %556 = vpow2.f32 %v279_v12  ;;  %v292_v25 = vsel %vm291_vm2, %v287_v9, %v283_v24  ;;  %v295_v36 = vsel %vm291_vm2, %v294_v35, %v286_v34 }
  0x59   : > { %558 = vpow2.f32 %v288_v13  ;;  %v301_v27 = vsel %vm300_vm3, %v296_v10, %v292_v25  ;;  %v304_v38 = vsel %vm300_vm3, %v303_v37, %v295_v36  ;;  %p643_p9 = pnand %p642_p6, %p636_p13 }
  0x5a   : > { %560 = vpow2.f32 %v297_v14 }
  0x64   : > { %v555_v15 = vpop.eup %554 }
  0x65   : > { %v557_v16 = vpop.eup %556 }
  0x66   : > { %v559_v17 = vpop.eup %558  ;;  %v281_v18 = vadd.f32 %v557_v16, %v555_v15 }
  0x67   : > { %v561_v19 = vpop.eup %560 }
  0x68   : > { %v290_v20 = vadd.f32 %v559_v17, %v281_v18 }
  0x6a   : > { %v299_v22 = vadd.f32 %v561_v19, %v290_v20 }
  0x6c   : > { %562 = vlog2.f32 %v299_v22 }
  0x79   : > { %v563_v26 = vpop.eup %562 }
  0x7a   : > { %v306_v28 = vmul.f32 0.6931472, %v563_v26 }
  0x7c   : > { %v307_v29 = vsub.f32 %v301_v27, %v306_v28 }
  0x7e   : > { %v308_v30 = vmul.f32 1.442695, %v307_v29  ;;  %v310_v40 = vmul.f32 %v307_v29, %v304_v38 }
  0x80   : > { %564 = vpow2.f32 %v308_v30 }
  0x8d   : > { %v565_v39 = vpop.eup %564 }
  0x8e   : > { %v311_v41 = vsub.f32 1.0, %v565_v39 }
  0x90   : > { %v312_v42 = vmul.f32 %v311_v41, %v311_v41 }
  0x92   : > { %v313_v43 = vmul.f32 %v312_v42, %v310_v40 }
  0x94   : > { %v314_v44 = vsub.f32 0.0, %v313_v43 }
  0x96   : > { %315 = vst [vmem:[%s257_s29] sm:$0x3] %v314_v44 }
  0x97   : > { %646 = shalt.err (!%p643_p9)
}
  0x98   : > { %s647_s15 = scalar_lea.hbm %s329_s4, 32  ;;  %s651_s28 = scalar_lea.hbm %s937_s3, 64 }
  0x99   : > { %p648_p12 = scmp.ne.s32.totalorder %s329_s4, %s647_s15  ;;  %p652_p1 = scmp.lt.s32.totalorder %s329_s4, %s937_s3 }
  0x9a   : > { %p653_p0 = scmp.lt.s32.totalorder %s651_s28, %s647_s15 }
  0x9b   : > { %p649_p5 = pnand %p648_p12, %p797_p8 }
  0x9c   : > { %p654_p4 = por %p653_p0, %p652_p1 }
  0x9d   : > { %p650_p11 = pneg %p649_p5 }
  0x9f   : > { %p655_p3 = pnand %p654_p4, %p650_p11 }
  0xa1   : > { %658 = shalt.err (!%p655_p3)
}
  0xa2   : > { %482 = dma.vmem_to_hbm [thread:$0]  (%p797_p8), %s332_s7, 32, %s329_s4, %s317_s5  }
  0xa3 PF: > { %s953_s27 = sld [smem:[#allocation14_spill]]  ;;  %s343_s22 = sand.u32 1, %s701_s12  }
  0xa4   : > { %p954_p7 = scmp.ne.s32.totalorder %s947_s24, 0  ;;  %s344_s10 = scalar_lea.sflag [#allocation4], %s343_s22 }
  0xa9   : > { %p955_p13 = scmp.ge.s32.totalorder %s953_s27, 2 }
  0xab   : > { %p496_p2 = pnand %p955_p13, %p954_p7 }
  0xad   : > { %p497_p10 = pneg %p496_p2 }
  0xaf   : > { %696 = dma.done.wait (%p497_p10), %s344_s10, 32  }
  0xb0   : > { %698 = vsyncadd (%p497_p10), %s344_s10, 4294967264  ;;  %s23_s17 = sadd.s32 1, %s953_s27   ;;  %s956_s23 = sld [smem:[#allocation15_spill]] }
  0xb1   : > { %p20_p6 = scmp.ge.s32.totalorder %s23_s17, 4   ;;  %s957_s12 = smov %s705_s13 }
  0xb2   : > { %s958_s13 = smov %s709_s14  ;;  %s959_s14 = smov %s840_s19 }
  0xb3   : > { %s960_s15 = smov %s717_s16  ;;  %22 = sbr.rel (!%p20_p6) target bundleno = 12 (0xc), region = 98 }
  0xb6   : > { %s961_s16 = smov %s956_s23 }
  0xb8   :  { %349 = vsyncpa [#allocation3], 1 }
  0xb9   :  { %351 = vsyncpa [#allocation3 + $0x1], 1 }
  0xba   :  { %352 = vsyncpa [#allocation8], 1 }
  0xbb   :  { %354 = vsyncpa [#allocation8 + $0x1], 1 }
  0xbc   :  { %355 = vsyncpa [#allocation4], 1 }
  0xbd   :  { %357 = vsyncpa [#allocation4 + $0x1], 1 }
  0xbe   :  { %358 = vsyncpa [#allocation5], 1 }
  0xbf   :  { %360 = vsyncpa [#allocation5 + $0x1], 1 }

</bundles_post_ra>
